<compile_context>
chip_gen: v7x
topology: tpu7x:2x2x1
jax: 0.10.0
libtpu: 0.0.40
codegen_flags: <defaults>
</compile_context>

<pallas_src>
import functools

import jax
import jax.numpy as jnp
from jax.experimental import pallas as pl
from jax.experimental.pallas import tpu as pltpu


def svr_sigmoid_predict_kernel(x_ref, svs_ref, dual_ref, params_ref, o_ref, *,
                               bf16_tanh):
    """Sigmoid-kernel SVR prediction, lane-dense output formulation.

    x_ref:      (TN, D) f32 VMEM  -- query samples, natural (samples, features)
    svs_ref:    (TM, D) f32 VMEM  -- gamma-scaled support vectors (M tile)
    dual_ref:   (1, TM) f32 VMEM  -- dual coefficients, lane-dense row tile
    params_ref: (2,)    f32 SMEM  -- [coef0, intercept]
    o_ref:      (1, TN) f32 VMEM  -- predictions (lane-dense); resident across
                                     the M (reduction) grid axis
    """
    j = pl.program_id(1)  # M (reduction) axis, innermost

    @pl.when(j == 0)
    def _init():
        o_ref[...] = jnp.zeros_like(o_ref)

    coef0 = params_ref[0]

    # Gram^T tile on the MXU: contract D of (TM, D) with D of (TN, D)
    # -> (TM, TN), f32 accumulate.  Samples stay on the 128-lane axis.
    gram_t = jax.lax.dot_general(
        svs_ref[...], x_ref[...],
        dimension_numbers=(((1,), (1,)), ((), ())),
        preferred_element_type=jnp.float32)

    arg = gram_t + coef0
    if bf16_tanh:
        # v6e/v7x: bf16 EUP tanh (~2x transcendental throughput).  Cast back to
        # f32 only for the dual-weighted accumulate (VPU cast has idle slots).
        k = jnp.tanh(arg.astype(jnp.bfloat16)).astype(jnp.float32)
    else:
        # v5e / older chips: f32-only EUP path.
        k = jnp.tanh(arg)

    # Dual-weighted partial reduction over this M tile on the (otherwise idle)
    # MXU: (1, TM) @ (TM, TN) -> (1, TN); accumulate into the resident output.
    o_ref[...] += jnp.dot(dual_ref[...], k, preferred_element_type=jnp.float32)

    @pl.when(j == pl.num_programs(1) - 1)
    def _finalize():
        o_ref[...] += params_ref[1]


def _round_up(a, b):
    return (a + b - 1) // b * b


def _device_kind():
    try:
        return jax.devices()[0].device_kind.lower()
    except Exception:
        return ""


def _is_v7(kind):
    return ("v7" in kind) or ("7x" in kind)


def _supports_bf16_eup(kind):
    # bf16 EUP/VPU exists on v6e and v7x; v5e and older are f32-only.
    return _is_v7(kind) or ("v6" in kind)


def make_svr_sigmoid_predictor(support_vectors, dual_coef, gamma, coef0,
                               intercept, *, tile_n=None, tile_m=None,
                               bf16_tanh=None):
    """One-time (model-load) prep of a fitted sigmoid SVR; returns predict(x).

    support_vectors: (M, D), dual_coef: (M,).  predict(x) takes (N, D) -> (N,).
    """
    kind = _device_kind()
    if bf16_tanh is None:
        bf16_tanh = _supports_bf16_eup(kind)
    is_v7 = _is_v7(kind)

    m, d = support_vectors.shape

    # Per-chip tile defaults: v5e/v6e have 128 MiB VMEM (amortize grid-step
    # overhead with big tiles); v7x has 64 MiB, so stay bounded there.
    if tile_m is None:
        tile_m = 1024 if is_v7 else 2048
    if tile_n is None:
        tile_n = 512 if is_v7 else 1024
    vmem_limit = (48 << 20) if is_v7 else (64 << 20)

    tm = min(tile_m, _round_up(m, 128))
    m_pad = _round_up(m, tm)

    # Static model data prepared once: gamma folded into the support vectors,
    # dual coefficients stored as a lane-dense row.  Zero-padded dual coeffs
    # make padded support vectors contribute exactly 0 to the decision sum.
    svs = jnp.zeros((m_pad, d), jnp.float32).at[:m, :].set(
        jnp.float32(gamma) * support_vectors.astype(jnp.float32))
    dual = jnp.zeros((1, m_pad), jnp.float32).at[0, :m].set(
        dual_coef.astype(jnp.float32))
    params = jnp.array([coef0, intercept], dtype=jnp.float32)  # SMEM scalars

    kernel = functools.partial(svr_sigmoid_predict_kernel, bf16_tanh=bf16_tanh)

    @jax.jit
    def predict(x):
        n = x.shape[0]
        assert x.shape[1] == d

        n128 = _round_up(n, 128)
        tn = min(tile_n, n128)
        if is_v7 and n128 >= 2 * 128:
            # Ensure >= 2 programs on the "parallel" N axis so both v7x
            # TensorCores get work (no effect on 1-TC chips).
            tn = min(tn, _round_up(-(-n128 // 2), 128))
        n_pad = _round_up(n, tn)

        # Single pass over X: pad samples to the tile multiple (no transpose,
        # no dtype cast -- D is tiny so f32 gram comes for free).
        xp = jnp.pad(x.astype(jnp.float32), ((0, n_pad - n), (0, 0)))

        grid = (n_pad // tn, m_pad // tm)

        out = pl.pallas_call(
            kernel,
            out_shape=jax.ShapeDtypeStruct((1, n_pad), jnp.float32),
            grid_spec=pltpu.PrefetchScalarGridSpec(
                num_scalar_prefetch=0,
                grid=grid,
                in_specs=[
                    pl.BlockSpec((tn, d), lambda i, j: (i, 0)),   # X tile
                    pl.BlockSpec((tm, d), lambda i, j: (j, 0)),   # scaled SVs
                    pl.BlockSpec((1, tm), lambda i, j: (0, j)),   # dual row
                    pl.BlockSpec(memory_space=pltpu.SMEM),        # [coef0, b]
                ],
                out_specs=pl.BlockSpec((1, tn), lambda i, j: (0, i)),
            ),
            compiler_params=pltpu.CompilerParams(
                dimension_semantics=("parallel", "arbitrary"),
                vmem_limit_bytes=vmem_limit),
        )(xp, svs, dual, params)

        return out[0, :n]

    return predict


def svr_predict(x, support_vectors, dual_coef, gamma, coef0, intercept, **kw):
    """Convenience wrapper: x (N, D) -> predictions (N,)."""
    predictor = make_svr_sigmoid_predictor(
        support_vectors, dual_coef, gamma, coef0, intercept, **kw)
    return predictor(x)


def prepare_inputs(encoder_inputs, labels):
    """Replicates Client_Train/Client_Test data flattening in plain JAX.

    encoder_inputs: (B, NODES, IN_CHANNELS, LEN_INPUT)
    labels:         (B, NODES, NUM_FOR_PREDICT)
    Returns input_all (B*NODES, LEN_INPUT), output_all (B*NODES,)
    matching the per-node concat `input_all = concat_i encoder_inputs[:, i, 0, :]`.
    """
    b, nodes, _, len_input = encoder_inputs.shape
    input_all = jnp.transpose(encoder_inputs[:, :, 0, :], (1, 0, 2)).reshape(
        b * nodes, len_input)
    output_all = jnp.transpose(labels[:, :, 0], (1, 0)).reshape(b * nodes)
    return input_all, output_all


if __name__ == "__main__":
    # Small synthetic shapes consistent with the module's data layout.
    BATCH = 2
    NODES = 4
    IN_CHANNELS = 3
    LEN_INPUT = 8
    NUM_FOR_PREDICT = 4
    N_SUPPORT = 16  # synthetic number of fitted SVR support vectors

    key = jax.random.PRNGKey(0)
    k1, k2, k3, k4 = jax.random.split(key, 4)

    encoder_inputs = jax.random.normal(
        k1, (BATCH, NODES, IN_CHANNELS, LEN_INPUT), dtype=jnp.float32)
    labels = jax.random.normal(
        k2, (BATCH, NODES, NUM_FOR_PREDICT), dtype=jnp.float32)

    # Deterministic synthetic "fitted" SVR parameters (shapes per sklearn SVR).
    support_vectors = jax.random.normal(k3, (N_SUPPORT, LEN_INPUT), dtype=jnp.float32)
    dual_coef = jax.random.normal(k4, (N_SUPPORT,), dtype=jnp.float32)
    gamma = 1.0 / LEN_INPUT
    coef0 = 0.0
    intercept = 0.1

    # Glue: flatten (batch, node) into the sample axis exactly as Client_* does.
    input_all, output_all = prepare_inputs(encoder_inputs, labels)

    # Pallas kernel prediction (model prep once, then jit'd predict).
    predictor = make_svr_sigmoid_predictor(
        support_vectors, dual_coef, gamma, coef0, intercept)
    preds = predictor(input_all)
    preds = jax.block_until_ready(preds)

    # Full-precision f32 reference (no bf16 rounding of the reference).
    gram = jnp.einsum("nd,md->nm", input_all, gamma * support_vectors,
                      precision=jax.lax.Precision.HIGHEST)
    ref = jnp.einsum("nm,m->n", jnp.tanh(gram + coef0),
                     dual_coef.astype(jnp.float32),
                     precision=jax.lax.Precision.HIGHEST) + intercept

    # Tolerance: on v6e/v7x the kernel uses bf16 EUP tanh (and the MXU gram may
    # round through bf16 passes at default precision), so allow a few percent;
    # tighter on the pure-f32 path.  Values are O(1), so this still catches any
    # structural/indexing bug.
    if _supports_bf16_eup(_device_kind()):
        atol, rtol = 5e-2, 5e-2
    else:
        atol, rtol = 2e-2, 2e-2

    assert preds.shape == (BATCH * NODES,)
    assert jnp.allclose(preds, ref, atol=atol, rtol=rtol), (
        float(jnp.max(jnp.abs(preds - ref))))

    # TODO(synk): SVR.fit (QP solve) and Client_Test's sklearn metrics
    # (MAE/RMSE/MAPE/R2) plus CSV/npz data loading have no clean Pallas
    # equivalent and are left out.
    print("KERNEL_OK")
</pallas_src>

<mosaic_0001>
module attributes {stable_mosaic.version = 11 : i64} {
  func.func @svr_sigmoid_predict_kernel(%arg0: i32, %arg1: i32, %arg2: memref<128x8xf32, #tpu.memory_space<vmem>>, %arg3: memref<128x8xf32, #tpu.memory_space<vmem>>, %arg4: memref<1x128xf32, #tpu.memory_space<vmem>>, %arg5: memref<2xf32, #tpu.memory_space<smem>>, %arg6: memref<1x128xf32, #tpu.memory_space<vmem>>) attributes {dimension_semantics = [#tpu.dimension_semantics<parallel>, #tpu.dimension_semantics<arbitrary>], iteration_bounds = array<i64: 1, 1>, scalar_prefetch = 0 : i64, scratch_operands = 0 : i64, tpu.core_type = #tpu.core_type<tc>, window_params = [{transform_indices = @transform_0, window_bounds = array<i64: 128, 8>}, {transform_indices = @transform_1, window_bounds = array<i64: 128, 8>}, {transform_indices = @transform_2, window_bounds = array<i64: 1, 128>}, {transform_indices = @transform_3, window_bounds = array<i64: 2>}, {transform_indices = @transform_4, window_bounds = array<i64: 1, 128>}]} {
    %c0_i32 = arith.constant 0 : i32
    %0 = arith.cmpi eq, %arg1, %c0_i32 : i32
    %1 = arith.extui %0 : i1 to i32
    %c0_i32_0 = arith.constant 0 : i32
    %2 = arith.cmpi ne, %1, %c0_i32_0 : i32
    scf.if %2 {
      %cst_14 = arith.constant 0.000000e+00 : f32
      %18 = vector.broadcast %cst_14 : f32 to vector<1x128xf32>
      %c0_15 = arith.constant 0 : index
      %c0_16 = arith.constant 0 : index
      %19 = vector.load %arg6[%c0_15, %c0_16] : memref<1x128xf32, #tpu.memory_space<vmem>>, vector<1x128xf32>
      tpu.vector_store %arg6[%c0_15, %c0_16], %18 {strides = array<i32>} : memref<1x128xf32, #tpu.memory_space<vmem>>, vector<1x128xf32>,
    } else {
    }
    %c0 = arith.constant 0 : index
    %3 = memref.load %arg5[%c0] : memref<2xf32, #tpu.memory_space<smem>>
    %c0_1 = arith.constant 0 : index
    %c0_2 = arith.constant 0 : index
    %4 = vector.load %arg3[%c0_1, %c0_2] : memref<128x8xf32, #tpu.memory_space<vmem>>, vector<128x8xf32>
    %c0_3 = arith.constant 0 : index
    %c0_4 = arith.constant 0 : index
    %5 = vector.load %arg2[%c0_3, %c0_4] : memref<128x8xf32, #tpu.memory_space<vmem>>, vector<128x8xf32>
    %cst = arith.constant dense<0.000000e+00> : vector<128x128xf32>
    %6 = tpu.matmul %4, %5, %cst {dimension_numbers = #tpu.dot_dimension_numbers<[1], [1], [0], [0], [0, 0, 1, 0], [], []>} : vector<128x8xf32>, vector<128x8xf32>, vector<128x128xf32> -> vector<128x128xf32>
    %7 = vector.broadcast %3 : f32 to vector<128x128xf32>
    %8 = arith.addf %6, %7 : vector<128x128xf32>
    %9 = math.tanh %8 : vector<128x128xf32>
    %c0_5 = arith.constant 0 : index
    %c0_6 = arith.constant 0 : index
    %10 = vector.load %arg6[%c0_5, %c0_6] : memref<1x128xf32, #tpu.memory_space<vmem>>, vector<1x128xf32>
    %c0_7 = arith.constant 0 : index
    %c0_8 = arith.constant 0 : index
    %11 = vector.load %arg4[%c0_7, %c0_8] : memref<1x128xf32, #tpu.memory_space<vmem>>, vector<1x128xf32>
    %cst_9 = arith.constant dense<0.000000e+00> : vector<1x128xf32>
    %12 = tpu.matmul %11, %9, %cst_9 {dimension_numbers = #tpu.dot_dimension_numbers<[1], [0], [0], [1], [0, 0, 1, 1], [], []>} : vector<1x128xf32>, vector<128x128xf32>, vector<1x128xf32> -> vector<1x128xf32>
    %13 = arith.addf %10, %12 : vector<1x128xf32>
    %c0_10 = arith.constant 0 : index
    %c0_11 = arith.constant 0 : index
    %14 = vector.load %arg6[%c0_10, %c0_11] : memref<1x128xf32, #tpu.memory_space<vmem>>, vector<1x128xf32>
    tpu.vector_store %arg6[%c0_10, %c0_11], %13 {strides = array<i32>} : memref<1x128xf32, #tpu.memory_space<vmem>>, vector<1x128xf32>,
    %c0_i32_12 = arith.constant 0 : i32
    %15 = arith.cmpi eq, %arg1, %c0_i32_12 : i32
    %16 = arith.extui %15 : i1 to i32
    %c0_i32_13 = arith.constant 0 : i32
    %17 = arith.cmpi ne, %16, %c0_i32_13 : i32
    scf.if %17 {
      %c0_14 = arith.constant 0 : index
      %c0_15 = arith.constant 0 : index
      %18 = vector.load %arg6[%c0_14, %c0_15] : memref<1x128xf32, #tpu.memory_space<vmem>>, vector<1x128xf32>
      %c1 = arith.constant 1 : index
      %19 = memref.load %arg5[%c1] : memref<2xf32, #tpu.memory_space<smem>>
      %20 = vector.broadcast %19 : f32 to vector<1x128xf32>
      %21 = arith.addf %18, %20 : vector<1x128xf32>
      %c0_16 = arith.constant 0 : index
      %c0_17 = arith.constant 0 : index
      %22 = vector.load %arg6[%c0_16, %c0_17] : memref<1x128xf32, #tpu.memory_space<vmem>>, vector<1x128xf32>
      tpu.vector_store %arg6[%c0_16, %c0_17], %21 {strides = array<i32>} : memref<1x128xf32, #tpu.memory_space<vmem>>, vector<1x128xf32>,
    } else {
    }
    return
  }
  func.func @transform_0(%arg0: i32, %arg1: i32) -> (i32, i32) {
    %c0_i32 = arith.constant 0 : i32
    %c0_i32_0 = arith.constant 0 : i32
    return %arg0, %c0_i32 : i32, i32
  }
  func.func @transform_1(%arg0: i32, %arg1: i32) -> (i32, i32) {
    %c0_i32 = arith.constant 0 : i32
    %c0_i32_0 = arith.constant 0 : i32
    return %arg1, %c0_i32 : i32, i32
  }
  func.func @transform_2(%arg0: i32, %arg1: i32) -> (i32, i32) {
    %c0_i32 = arith.constant 0 : i32
    %c0_i32_0 = arith.constant 0 : i32
    return %c0_i32, %arg1 : i32, i32
  }
  func.func @transform_3(%arg0: i32, %arg1: i32) -> i32 {
    %c0_i32 = arith.constant 0 : i32
    %c0_i32_0 = arith.constant 0 : i32
    return %c0_i32 : i32
  }
  func.func @transform_4(%arg0: i32, %arg1: i32) -> (i32, i32) {
    %c0_i32 = arith.constant 0 : i32
    %c0_i32_0 = arith.constant 0 : i32
    return %c0_i32, %arg0 : i32, i32
  }
}

</mosaic_0001>

<bundles_post_ra>
// kernel: predict.1
= control target key start
LH: loop header
LB: loop body
LE: loop exit
PB: predicated region body
PF: predicated region fallthrough
CT: control target
= control target key end

     0   :  { %9 = vsyncpa [#allocation3], 0  ;;  %s1039_s0 = inlined_call_operand.hbm [shape: f32[128,8], index: 0, kind: input, shape index: {}]   ;;  %s1040_s1 = inlined_call_operand.hbm [shape: f32[128,8], index: 1, kind: input, shape index: {}]   ;;  %s1041_s2 = inlined_call_operand.hbm [shape: f32[1,128], index: 2, kind: input, shape index: {}]   ;;  %s1042_s3 = inlined_call_operand.hbm [shape: f32[2], index: 3, kind: input, shape index: {}]   ;;  %s1043_s4 = inlined_call_operand.hbm [shape: f32[1,128], index: 4, kind: output, shape index: {}]  }
   0x1   :  { %10 = vsyncpa [#allocation7], 0 }
   0x2   :  { %11 = vsyncpa [#allocation5], 0 }
   0x3   :  { %12 = vsyncpa [#allocation4], 0  ;;  %s857_s15 = smov [#allocation6]   ;;  %s858_s17 = smov [#allocation2]  }
   0x4   :  { %s30_s16 = sshll.u32 %s857_s15, 4  ;;  %s18_s18 = sshll.u32 %s858_s17, 4  ;;  %s31_s16 = int_to_ptr.vmem [resolvable:$true] %s30_s16  ;;  %s892_s18 = int_to_ptr.vmem [resolvable:$true] %s18_s18 }
   0x5   :  { %s751_s21 = scalar_lea.hbm %s1040_s1, 2048 }
   0x6   :  { %p752_p0 = scmp.ne.s32.totalorder %s1040_s1, %s751_s21  ;;  %p755_p1 = scmp.lt.u32.totalorder %s751_s21, %s1040_s1 }
   0x8   :  { %p757_p2 = pnand %p755_p1, %p752_p0 }
   0xa   :  { %760 = shalt.err (!%p757_p2)
}
   0xb   :  { %s761_s26 = scalar_lea.vmem %s31_s16, 2048  ;;  %p766_p4 = scmp.lt.s32.totalorder %s31_s16, %s31_s16 }
   0xc   :  { %p762_p3 = scmp.ne.s32.totalorder %s31_s16, %s761_s26  ;;  %p767_p5 = scmp.lt.s32.totalorder %s761_s26, %s761_s26 }
   0xe   :  { %p768_p6 = por %p767_p5, %p766_p4 }
  0x10   :  { %p769_p7 = pnand %p768_p6, %p762_p3 }
  0x12   :  { %772 = shalt.err (!%p769_p7)
}
  0x13   :  { %s859_s27 = smov 128   ;;  %s860_s28 = smov 8  }
  0x14   :  { %36 = dma.hbm_to_vmem [thread:$0]  %s1040_s1, 2048, %s31_s16, [#allocation7], %s859_s27, %s859_s27, %s860_s28  }
  0x15   :  { %s773_s7 = scalar_lea.hbm %s1039_s0, 2048 }
  0x16   :  { %p774_p8 = scmp.ne.s32.totalorder %s1039_s0, %s773_s7  ;;  %p777_p9 = scmp.lt.u32.totalorder %s773_s7, %s1039_s0 }
  0x18   :  { %p779_p10 = pnand %p777_p9, %p774_p8 }
  0x1a   :  { %782 = shalt.err (!%p779_p10)
}
  0x1b   :  { %s783_s12 = scalar_lea.vmem %s892_s18, 2048  ;;  %p788_p12 = scmp.lt.s32.totalorder %s892_s18, %s892_s18 }
  0x1c   :  { %p784_p11 = scmp.ne.s32.totalorder %s892_s18, %s783_s12  ;;  %p789_p13 = scmp.lt.s32.totalorder %s783_s12, %s783_s12 }
  0x1e   :  { %p790_p0 = por %p789_p13, %p788_p12 }
  0x20   :  { %p791_p1 = pnand %p790_p0, %p784_p11 }
  0x22   :  { %794 = shalt.err (!%p791_p1)
}
  0x23   :  { %24 = dma.hbm_to_vmem [thread:$0]  %s1039_s0, 2048, %s892_s18, [#allocation3], %s859_s27, %s859_s27, %s860_s28  }
  0x24   :  { %s861_s14 = smov [#allocation8]   ;;  %s795_s19 = scalar_lea.hbm %s1041_s2, 16 }
  0x25   :  { %s43_s15 = sshll.u32 %s861_s14, 4  ;;  %p796_p2 = scmp.ne.s32.totalorder %s1041_s2, %s795_s19  ;;  %s44_s15 = int_to_ptr.vmem [resolvable:$true] %s43_s15 }
  0x26   :  { %p799_p3 = scmp.lt.u32.totalorder %s795_s19, %s1041_s2 }
  0x28   :  { %p801_p4 = pnand %p799_p3, %p796_p2 }
  0x2a   :  { %804 = shalt.err (!%p801_p4)
}
  0x2b   :  { %s805_s24 = scalar_lea.vmem %s44_s15, 16  ;;  %s809_s0 = scalar_lea.vmem %s44_s15, 32 }
  0x2c   :  { %p806_p5 = scmp.ne.s32.totalorder %s44_s15, %s805_s24  ;;  %p810_p6 = scmp.lt.s32.totalorder %s44_s15, %s44_s15 }
  0x2d   :  { %p811_p7 = scmp.lt.s32.totalorder %s809_s0, %s805_s24 }
  0x2f   :  { %p812_p8 = por %p811_p7, %p810_p6 }
  0x31   :  { %p813_p9 = pnand %p812_p8, %p806_p5 }
  0x33   :  { %816 = shalt.err (!%p813_p9)
}
  0x34   :  { %46 = dma.hbm_to_vmem [thread:$0]  %s1041_s2, 16, %s44_s15, [#allocation7]  }
  0x35   :  { %s817_s28 = scalar_lea.hbm %s1042_s3, 16 }
  0x36   :  { %p818_p10 = scmp.ne.s32.totalorder %s1042_s3, %s817_s28  ;;  %p821_p11 = scmp.lt.u32.totalorder %s817_s28, %s1042_s3 }
  0x38   :  { %p823_p12 = pnand %p821_p11, %p818_p10 }
  0x3a   :  { %826 = shalt.err (!%p823_p12)
}
  0x3b   :  { %s862_s7 = smov [#allocation9]  }
  0x3c   :  { %54 = dma.hbm_to_smem %s1042_s3, 16, %s862_s7, [#allocation5]  }
  0x3d   :  { %849 = dma.done.wait [#allocation3], 2048  }
  0x3e   :  { %850 = vsyncadd [#allocation3], 4294965248 }
  0x3f   :  { %851 = dma.done.wait [#allocation7], 2064  }
  0x40   :  { %852 = vsyncadd [#allocation7], 4294965232 }
  0x41   :  { %853 = dma.done.wait [#allocation5], 16  }
  0x42   :  { %854 = vsyncadd [#allocation5], 4294967280 }
  0x43   :  { %67 = sfence }
  0x44   :  { %v90_v0 = vld [vmem:[#allocation2] sm:$0xff]  ;;  %v91_v1 = vld [vmem:[#allocation2 + $0x8] sm:$0xff]  ;;  %vm107_vm0 = vcmask 64512   ;;  %v92_v2 = vld [vmem:[#allocation2 + $0x10] sm:$0xff]  ;;  %v863_v41 = vmov 0.0|0.0   ;;  %v864_v42 = vmov 0.0  }
  0x45   :  { %v637_v3 = vpack.c.bf16 %v91_v1, %v90_v0  ;;  %vm949_vm1 = vmpackc.low %vm107_vm0, %vm107_vm0  ;;  %v93_v5 = vld [vmem:[#allocation2 + $0x18] sm:$0xff]  ;;  %v74_v7 = vld [vmem:[#allocation6] sm:$0xff]  ;;  %685 = vmatprep.subr.bf16.mxu1 %v863_v41  ;;  %72 = vst [vmem:[#allocation10] sm:$0x1] %v864_v42  ;;  %vm865_vm2 = vmmov 0   ;;  %s73_s2 = sld [smem:[#allocation9]] }
  0x46   :  { %v643_v6 = vpack.c.bf16 %v93_v5, %v92_v2  ;;  %v94_v8 = vld [vmem:[#allocation2 + $0x20] sm:$0xff]  ;;  %v95_v9 = vld [vmem:[#allocation2 + $0x28] sm:$0xff]  ;;  %578 = vmatprep.mubr.msk.f32.mxu0 %vm107_vm0, %v74_v7  ;;  %v96_v11 = vld [vmem:[#allocation2 + $0x30] sm:$0xff]  ;;  %634 = vmatprep.mubr.msk.f32.mxu1 %vm865_vm2, %v864_v42  ;;  %s496_s3 = sld [smem:[#allocation9 + $0x1]]  ;;  %s866_s10 = smov [#allocation10]  }
  0x47   :  { %639 = vmatprep.subr.msk.bf16.mxu0 %vm949_vm1, %v637_v3  ;;  %v649_v10 = vpack.c.bf16 %v95_v9, %v94_v8  ;;  %v97_v12 = vld [vmem:[#allocation2 + $0x38] sm:$0xff]  ;;  %v98_v14 = vld [vmem:[#allocation2 + $0x40] sm:$0xff]  ;;  %v99_v15 = vld [vmem:[#allocation2 + $0x48] sm:$0xff]  ;;  %s453_s11 = sshll.u32 %s866_s10, 4  ;;  %s454_s11 = int_to_ptr.vmem [resolvable:$true] %s453_s11 }
  0x48   :  { %642 = vmatpush3.bf16.xpose.msk.msra.mxu0 %vm949_vm1, %v637_v3  ;;  %v655_v13 = vpack.c.bf16 %v97_v12, %v96_v11  ;;  %v661_v16 = vpack.c.bf16 %v99_v15, %v98_v14  ;;  %v100_v17 = vld [vmem:[#allocation2 + $0x50] sm:$0xff]  ;;  %v101_v18 = vld [vmem:[#allocation2 + $0x58] sm:$0xff]  ;;  %v102_v20 = vld [vmem:[#allocation2 + $0x60] sm:$0xff]  ;;  %s827_s12 = scalar_lea.vmem %s454_s11, 16  ;;  %s831_s1 = scalar_lea.vmem %s454_s11, 32 }
  0x49   :  { %645 = vmatprep.subr.msk.bf16.mxu0 %vm949_vm1, %v643_v6  ;;  %v667_v19 = vpack.c.bf16 %v101_v18, %v100_v17  ;;  %v103_v21 = vld [vmem:[#allocation2 + $0x68] sm:$0xff]  ;;  %v104_v23 = vld [vmem:[#allocation2 + $0x70] sm:$0xff]  ;;  %v105_v24 = vld [vmem:[#allocation2 + $0x78] sm:$0xff]  ;;  %p828_p13 = scmp.ne.s32.totalorder %s454_s11, %s827_s12  ;;  %p832_p0 = scmp.lt.s32.totalorder %s454_s11, %s454_s11 }
  0x4a   :  { %v673_v22 = vpack.c.bf16 %v103_v21, %v102_v20  ;;  %v679_v25 = vpack.c.bf16 %v105_v24, %v104_v23  ;;  %v75_v26 = vld [vmem:[#allocation6 + $0x8] sm:$0xff]  ;;  %v76_v27 = vld [vmem:[#allocation6 + $0x10] sm:$0xff]  ;;  %v77_v28 = vld [vmem:[#allocation6 + $0x18] sm:$0xff]  ;;  %p833_p1 = scmp.lt.s32.totalorder %s831_s1, %s827_s12 }
  0x4b   :  { %v78_v29 = vld [vmem:[#allocation6 + $0x20] sm:$0xff]  ;;  %v79_v30 = vld [vmem:[#allocation6 + $0x28] sm:$0xff]  ;;  %v80_v31 = vld [vmem:[#allocation6 + $0x30] sm:$0xff]  ;;  %v1002_v43 = vstv %s73_s2 }
  0x4c   :  { %v81_v32 = vld [vmem:[#allocation6 + $0x38] sm:$0xff]  ;;  %v82_v33 = vld [vmem:[#allocation6 + $0x40] sm:$0xff]  ;;  %v83_v34 = vld [vmem:[#allocation6 + $0x48] sm:$0xff]  ;;  %v444_v42 = vstv %s496_s3  ;;  %p834_p2 = por %p833_p1, %p832_p0 }
  0x4d   :  { %v84_v35 = vld [vmem:[#allocation6 + $0x50] sm:$0xff]  ;;  %v85_v36 = vld [vmem:[#allocation6 + $0x58] sm:$0xff]  ;;  %v86_v37 = vld [vmem:[#allocation6 + $0x60] sm:$0xff] }
  0x4e   :  { %v87_v38 = vld [vmem:[#allocation6 + $0x68] sm:$0xff]  ;;  %v88_v39 = vld [vmem:[#allocation6 + $0x70] sm:$0xff]  ;;  %v89_v40 = vld [vmem:[#allocation6 + $0x78] sm:$0xff]  ;;  %p835_p3 = pnand %p834_p2, %p828_p13 }
  0x50   :  { %648 = vmatpush3.bf16.xpose.msk.msra.mxu0 %vm949_vm1, %v643_v6 }
  0x51   :  { %651 = vmatprep.subr.msk.bf16.mxu0 %vm949_vm1, %v649_v10 }
  0x58   :  { %654 = vmatpush3.bf16.xpose.msk.msra.mxu0 %vm949_vm1, %v649_v10 }
  0x59   :  { %657 = vmatprep.subr.msk.bf16.mxu0 %vm949_vm1, %v655_v13 }
  0x60   :  { %660 = vmatpush3.bf16.xpose.msk.msra.mxu0 %vm949_vm1, %v655_v13 }
  0x61   :  { %663 = vmatprep.subr.msk.bf16.mxu0 %vm949_vm1, %v661_v16 }
  0x68   :  { %666 = vmatpush3.bf16.xpose.msk.msra.mxu0 %vm949_vm1, %v661_v16 }
  0x69   :  { %669 = vmatprep.subr.msk.bf16.mxu0 %vm949_vm1, %v667_v19 }
  0x70   :  { %672 = vmatpush3.bf16.xpose.msk.msra.mxu0 %vm949_vm1, %v667_v19 }
  0x71   :  { %675 = vmatprep.subr.msk.bf16.mxu0 %vm949_vm1, %v673_v22 }
  0x78   :  { %678 = vmatpush3.bf16.xpose.msk.msra.mxu0 %vm949_vm1, %v673_v22 }
  0x79   :  { %681 = vmatprep.subr.msk.bf16.mxu0 %vm949_vm1, %v679_v25 }
  0x80   :  { %684 = vmatpush3.bf16.xpose.msk.msra.mxu0 %vm949_vm1, %v679_v25 }
  0x87   :  { %579 = vmatmul.mubr.msk.f32.vlgmr.msra.gmra.mrb[0].mxu0 %vm107_vm0, %v75_v26 }
  0x88   :  { %581 = vmatprep.mubr.msk.f32.mxu0 %vm107_vm0, %v76_v27 }
  0x8b   :  { %582 = vmatmul.mubr.msk.f32.gmra.mrb[2].mxu0 %vm107_vm0, %v77_v28 }
  0x8c   :  { %584 = vmatprep.mubr.msk.f32.mxu0 %vm107_vm0, %v78_v29 }
  0x8f   :  { %585 = vmatmul.mubr.msk.f32.gmra.mrb[4].mxu0 %vm107_vm0, %v79_v30 }
  0x90   :  { %587 = vmatprep.mubr.msk.f32.mxu0 %vm107_vm0, %v80_v31 }
  0x93   :  { %588 = vmatmul.mubr.msk.f32.gmra.mrb[6].mxu0 %vm107_vm0, %v81_v32 }
  0x94   :  { %590 = vmatprep.mubr.msk.f32.mxu0 %vm107_vm0, %v82_v33 }
  0x97   :  { %591 = vmatmul.mubr.msk.f32.gmra.mrb[8].mxu0 %vm107_vm0, %v83_v34 }
  0x98   :  { %593 = vmatprep.mubr.msk.f32.mxu0 %vm107_vm0, %v84_v35 }
  0x9b   :  { %594 = vmatmul.mubr.msk.f32.gmra.mrb[10].mxu0 %vm107_vm0, %v85_v36  ;;  %v366_v36 = vld [vmem:[#allocation8] sm:$0x1] }
  0x9c   :  { %596 = vmatprep.mubr.msk.f32.mxu0 %vm107_vm0, %v86_v37  ;;  %v365_v37 = vld [vmem:[#allocation10] sm:$0x1] }
  0x9f   :  { %597 = vmatmul.mubr.msk.f32.gmra.mrb[12].mxu0 %vm107_vm0, %v87_v38 }
  0xa0   :  { %599 = vmatprep.mubr.msk.f32.mxu0 %vm107_vm0, %v88_v39 }
  0xa3   :  { %600 = vmatmul.mubr.msk.f32.gmra.mrb[14].mxu0 %vm107_vm0, %v89_v40 }
 0x15a   :  { %v580_v44 = vpop.f32.mrb[0].mxu0 }
 0x15b   :  { %v276_v45 = vadd.f32 %v580_v44, %v1002_v43  ;;  %v270_v46 = vpop.f32.mrb[1].mxu0 }
 0x15c   :  { %v271_v47 = vadd.f32 %v270_v46, %v1002_v43 }
 0x15d   :  { %719 = vtanh.f32 %v276_v45 }
 0x15e   :  { %721 = vtanh.f32 %v271_v47  ;;  %v583_v48 = vpop.f32.mrb[2].mxu0 }
 0x15f   :  { %v286_v49 = vadd.f32 %v583_v48, %v1002_v43  ;;  %v280_v50 = vpop.f32.mrb[3].mxu0 }
 0x160   :  { %v281_v51 = vadd.f32 %v280_v50, %v1002_v43 }
 0x161   :  { %723 = vtanh.f32 %v286_v49 }
 0x162   :  { %725 = vtanh.f32 %v281_v51  ;;  %v586_v52 = vpop.f32.mrb[4].mxu0 }
 0x163   :  { %v296_v53 = vadd.f32 %v586_v52, %v1002_v43  ;;  %v290_v54 = vpop.f32.mrb[5].mxu0 }
 0x164   :  { %v291_v55 = vadd.f32 %v290_v54, %v1002_v43 }
 0x165   :  { %727 = vtanh.f32 %v296_v53 }
 0x166   :  { %729 = vtanh.f32 %v291_v55  ;;  %v589_v56 = vpop.f32.mrb[6].mxu0 }
 0x167   :  { %v720_v57 = vpop.eup %719  ;;  %v306_v58 = vadd.f32 %v589_v56, %v1002_v43  ;;  %v300_v59 = vpop.f32.mrb[7].mxu0 }
 0x168   :  { %v722_v60 = vpop.eup %721  ;;  %v301_v61 = vadd.f32 %v300_v59, %v1002_v43 }
 0x169   :  { %731 = vtanh.f32 %v306_v58  ;;  %v686_v62 = vpack.c.bf16 %v720_v57, %v722_v60 }
 0x16a   :  { %733 = vtanh.f32 %v301_v61  ;;  %v592_v63 = vpop.f32.mrb[8].mxu0 }
 0x16b   :  { %v724_v0 = vpop.eup %723  ;;  %v316_v1 = vadd.f32 %v592_v63, %v1002_v43  ;;  %v310_v2 = vpop.f32.mrb[9].mxu0  ;;  %687 = vmatpush3.bf16.msra.mxu1 %v686_v62 }
 0x16c   :  { %v726_v3 = vpop.eup %725  ;;  %v311_v4 = vadd.f32 %v310_v2, %v1002_v43  ;;  %688 = vmatprep.subr.bf16.mxu1 %v863_v41 }
 0x16d   :  { %735 = vtanh.f32 %v316_v1  ;;  %v689_v5 = vpack.c.bf16 %v724_v0, %v726_v3 }
 0x16e   :  { %737 = vtanh.f32 %v311_v4  ;;  %v595_v6 = vpop.f32.mrb[10].mxu0 }
 0x16f   :  { %v728_v7 = vpop.eup %727  ;;  %v326_v8 = vadd.f32 %v595_v6, %v1002_v43  ;;  %v320_v9 = vpop.f32.mrb[11].mxu0  ;;  %690 = vmatpush3.bf16.msra.mxu1 %v689_v5 }
 0x170   :  { %v730_v10 = vpop.eup %729  ;;  %v321_v11 = vadd.f32 %v320_v9, %v1002_v43  ;;  %691 = vmatprep.subr.bf16.mxu1 %v863_v41 }
 0x171   :  { %739 = vtanh.f32 %v326_v8  ;;  %v692_v12 = vpack.c.bf16 %v728_v7, %v730_v10 }
 0x172   :  { %741 = vtanh.f32 %v321_v11  ;;  %v598_v13 = vpop.f32.mrb[12].mxu0 }
 0x173   :  { %v732_v14 = vpop.eup %731  ;;  %v336_v15 = vadd.f32 %v598_v13, %v1002_v43  ;;  %v330_v16 = vpop.f32.mrb[13].mxu0  ;;  %693 = vmatpush3.bf16.msra.mxu1 %v692_v12 }
 0x174   :  { %v734_v17 = vpop.eup %733  ;;  %v331_v18 = vadd.f32 %v330_v16, %v1002_v43  ;;  %694 = vmatprep.subr.bf16.mxu1 %v863_v41 }
 0x175   :  { %743 = vtanh.f32 %v336_v15  ;;  %v695_v19 = vpack.c.bf16 %v732_v14, %v734_v17 }
 0x176   :  { %745 = vtanh.f32 %v331_v18  ;;  %v601_v20 = vpop.f32.mrb[14].mxu0 }
 0x177   :  { %v736_v21 = vpop.eup %735  ;;  %v346_v22 = vadd.f32 %v601_v20, %v1002_v43  ;;  %v340_v23 = vpop.f32.mrb[15].mxu0  ;;  %696 = vmatpush3.bf16.msra.mxu1 %v695_v19 }
 0x178   :  { %v738_v24 = vpop.eup %737  ;;  %v341_v25 = vadd.f32 %v340_v23, %v1002_v43  ;;  %697 = vmatprep.subr.bf16.mxu1 %v863_v41 }
 0x179   :  { %747 = vtanh.f32 %v346_v22  ;;  %v698_v26 = vpack.c.bf16 %v736_v21, %v738_v24 }
 0x17a   :  { %749 = vtanh.f32 %v341_v25 }
 0x17b   :  { %v740_v27 = vpop.eup %739  ;;  %699 = vmatpush3.bf16.msra.mxu1 %v698_v26 }
 0x17c   :  { %v742_v28 = vpop.eup %741  ;;  %700 = vmatprep.subr.bf16.mxu1 %v863_v41 }
 0x17d   :  { %v701_v29 = vpack.c.bf16 %v740_v27, %v742_v28 }
 0x17f   :  { %v744_v30 = vpop.eup %743  ;;  %702 = vmatpush3.bf16.msra.mxu1 %v701_v29 }
 0x180   :  { %v746_v31 = vpop.eup %745  ;;  %703 = vmatprep.subr.bf16.mxu1 %v863_v41 }
 0x181   :  { %v704_v32 = vpack.c.bf16 %v744_v30, %v746_v31 }
 0x183   :  { %v748_v33 = vpop.eup %747  ;;  %705 = vmatpush3.bf16.msra.mxu1 %v704_v32 }
 0x184   :  { %v750_v34 = vpop.eup %749  ;;  %706 = vmatprep.subr.bf16.mxu1 %v863_v41 }
 0x185   :  { %v707_v35 = vpack.c.bf16 %v748_v33, %v750_v34 }
 0x187   :  { %708 = vmatpush3.bf16.msra.mxu1 %v707_v35 }
 0x18a   :  { %635 = vmatmul.mubr.f32.vlgmr.msra.gmra.mrb[0].mxu1 %v366_v36 }
 0x25d   :  { %v433_v38 = vpop.f32.mrb[0].mxu1 }
 0x25e   :  { %v437_v39 = vadd.f32 %v433_v38, %v365_v37  ;;  %v636_v40 = vpop.f32.mrb[1].mxu1 }
 0x260   :  { %438 = vst [vmem:[#allocation10] sm:$0x1] %v437_v39 }
 0x267   :  { %v442_v43 = vld [vmem:[#allocation10] sm:$0x1] }
 0x268   :  { %v445_v44 = vadd.f32 %v444_v42, %v442_v43 }
 0x26a   :  { %446 = vst [vmem:[#allocation10] sm:$0x1] %v445_v44 }
 0x26b   :  { %838 = shalt.err (!%p835_p3)
}
 0x26c   :  { %s839_s15 = scalar_lea.hbm %s1043_s4, 16 }
 0x26d   :  { %p840_p4 = scmp.ne.s32.totalorder %s1043_s4, %s839_s15  ;;  %p843_p5 = scmp.lt.u32.totalorder %s839_s15, %s1043_s4 }
 0x26f   :  { %p845_p6 = pnand %p843_p5, %p840_p4 }
 0x271   :  { %848 = shalt.err (!%p845_p6)
}
 0x272   :  { %456 = dma.vmem_to_hbm [thread:$0]  %s454_s11, 16, %s1043_s4, [#allocation4]  }
 0x273   :  { %855 = dma.done.wait [#allocation4], 16  }
 0x274   :  { %856 = vsyncadd [#allocation4], 4294967280 }
 0x275   :  { %460 = vsyncpa [#allocation3], 1 }
 0x276   :  { %461 = vsyncpa [#allocation7], 1 }
 0x277   :  { %462 = vsyncpa [#allocation4], 1 }
 0x278   :  { %463 = vsyncpa [#allocation5], 1 }

</bundles_post_ra>
